<compile_context>
chip_gen: v5e
topology: v5e:2x2
jax: 0.10.0
libtpu: 0.0.40
codegen_flags: <defaults>
</compile_context>

<pallas_src>
import jax
import jax.numpy as jnp
from jax.experimental import pallas as pl
from jax.experimental.pallas import tpu as pltpu

# ---------------- model constants (mirror the PyTorch GINConvNet spec) ----------------
NUM_FEATURES = 8        # dataset[0]
NUM_CLASSES  = 4        # dataset[1]
DIM          = 32       # hidden width ("dim" in the reference module)
EPS          = 0.0      # GINConv default eps (train_eps=False)
BN_EPS       = 1e-5     # BatchNorm1d eps

NUM_GRAPHS      = 2
NODES_PER_GRAPH = 8
NUM_NODES       = NUM_GRAPHS * NODES_PER_GRAPH


def _round_up(v, m):
    return ((v + m - 1) // m) * m


# ---------------- TPU padding constants (right-sized) ----------------
NP = _round_up(NUM_NODES, 16)      # padded total node count (clean bf16 operand tiles)
FP = _round_up(NUM_FEATURES, 16)   # padded input-feature dim  (8 -> 16)
DP = _round_up(DIM, 16)            # hidden dim (32, already aligned)
CP = DP                            # class dim padded into the same 32-lane slab
GP = _round_up(NUM_GRAPHS, 8)      # padded graph (output-row) count
BIAS_ROWS = 16                     # bias/BN-affine slab rows (10 real, padded to 16)


# ---------------- fused kernel ----------------

def gin_kernel(agg_ref, x_ref, pool_ref,
               w1a_ref, w1b_ref, w2a_ref, w2b_ref, fc1w_ref, wtail_ref,
               bias_ref, out_ref):
    f32 = jnp.float32

    def mm(a, b):   # bf16 operands -> MXU, f32 accumulation
        return jnp.dot(a.astype(jnp.bfloat16), b.astype(jnp.bfloat16),
                       preferred_element_type=f32)

    bias = bias_ref[...]                       # (BIAS_ROWS, DP) f32
    b1a  = bias[0:1, :]
    b1b  = bias[1:2, :]
    bn1s = bias[2:3, :]
    bn1b = bias[3:4, :]
    b2a  = bias[4:5, :]
    b2b  = bias[5:6, :]
    bn2s = bias[6:7, :]
    bn2b = bias[7:8, :]
    fc1b = bias[8:9, :]
    btail = bias[9:10, :]                      # fc2b @ linw + linb (padded)

    agg = agg_ref[...]                         # (NP, NP)  block-diag A + (1+eps) I
    x   = x_ref[...]                           # (NP, FP)

    # ---- GINConv1: MLP1((1+eps)*x_i + sum_j x_j) == MLP1(agg @ x), outer ReLU, BN1
    h = mm(agg, x)
    h = jnp.maximum(mm(h, w1a_ref[...]) + b1a, 0.0)   # Linear -> ReLU
    h = mm(h, w1b_ref[...]) + b1b                     # Linear
    h = jnp.maximum(h, 0.0)                           # F.relu(conv1(...))
    h = h * bn1s + bn1b                               # BatchNorm1d (eval affine)

    # ---- GINConv2 + ReLU + BN2
    h = mm(agg, h)
    h = jnp.maximum(mm(h, w2a_ref[...]) + b2a, 0.0)
    h = mm(h, w2b_ref[...]) + b2b
    h = jnp.maximum(h, 0.0)
    h = h * bn2s + bn2b

    # ---- fc1 -> ReLU -> dropout(eval, identity)
    h = jnp.maximum(mm(h, fc1w_ref[...]) + fc1b, 0.0)

    # ---- global_mean_pool, then fused (fc2 o lin) tail:
    #      pool@(h@fc2w + fc2b)@linw + linb == (pool@h)@(fc2w@linw) + (fc2b@linw + linb)
    #      (pool rows sum to 1), so fc2 never runs over the per-node rows.
    pooled = mm(pool_ref[...], h)              # (GP, DP)
    out = mm(pooled, wtail_ref[...]) + btail   # (GP, CP)
    out_ref[...] = out.astype(out_ref.dtype)


# ---------------- glue: padding, preprocessing, params ----------------

def pad_to(a, shape):
    return jnp.pad(a, [(0, t - s) for s, t in zip(a.shape, shape)])


def bn_affine(bn):
    """Eval-mode BatchNorm1d as a per-channel affine: y = x * scale + shift."""
    scale = bn["gamma"] / jnp.sqrt(bn["var"] + BN_EPS)
    shift = bn["beta"] - bn["mean"] * scale
    return scale, shift


def pad_params(rp):
    bn1s, bn1b = bn_affine(rp["bn1"])
    bn2s, bn2b = bn_affine(rp["bn2"])

    # Algebraic tail collapse (eval dropout = identity, pool rows sum to 1).
    wtail = jnp.dot(rp["fc2w"], rp["linw"])                  # (DIM, C)
    btail = jnp.dot(rp["fc2b"], rp["linw"]) + rp["linb"]     # (C,)

    def w(a, rows, cols):       # weights go to the MXU in bf16 (zero K-padding is exact)
        return pad_to(a, (rows, cols)).astype(jnp.bfloat16)

    bias_rows = [rp["b1a"], rp["b1b"], bn1s, bn1b,
                 rp["b2a"], rp["b2b"], bn2s, bn2b,
                 rp["fc1b"], btail]
    slab = jnp.concatenate([pad_to(v.reshape(1, -1), (1, DP)) for v in bias_rows], axis=0)
    slab = pad_to(slab, (BIAS_ROWS, DP)).astype(jnp.float32)

    return dict(
        w1a=w(rp["w1a"], FP, DP), w1b=w(rp["w1b"], DP, DP),
        w2a=w(rp["w2a"], DP, DP), w2b=w(rp["w2b"], DP, DP),
        fc1w=w(rp["fc1w"], DP, DP), wtail=w(wtail, DP, CP),
        bias=slab)


def build_inputs(x, edge_index, batch):
    """Block-diagonal AGG = A + (1+eps) I over ALL graphs, padded features, mean-pool rows.

    Scatter-free: adjacency via one-hot matmuls, pooling via broadcast-compare one-hot,
    padding via static jnp.pad.  Uses global node ids only (no sorted-batch assumption).
    """
    n, _ = x.shape
    src, dst = edge_index[0], edge_index[1]

    node_ids = jnp.arange(NP, dtype=src.dtype)
    src_oh = (src[:, None] == node_ids[None, :]).astype(jnp.float32)   # (E, NP)
    dst_oh = (dst[:, None] == node_ids[None, :]).astype(jnp.float32)   # (E, NP)
    adj = jnp.dot(dst_oh.T, src_oh)        # A[d, s] = edge multiplicity (duplicates SUM)
    agg = adj + (1.0 + EPS) * jnp.eye(NP, dtype=jnp.float32)
    # bf16 agg is exact while (multiplicity + 1 + eps) <= 256.

    xp = pad_to(x, (NP, FP))

    graph_ids = jnp.arange(GP, dtype=batch.dtype)
    onehot = (batch[None, :] == graph_ids[:, None]).astype(jnp.float32)   # (GP, n)
    counts = onehot.sum(axis=1, keepdims=True)
    pool = onehot / jnp.maximum(counts, 1.0)   # empty/padded graphs -> zero rows (no NaN)
    pool = pad_to(pool, (GP, NP))

    bf = jnp.bfloat16
    return agg.astype(bf), xp.astype(bf), pool.astype(bf)


def _pallas_forward(agg, xp, pool, pp):
    operands = (agg, xp, pool,
                pp["w1a"], pp["w1b"], pp["w2a"], pp["w2b"],
                pp["fc1w"], pp["wtail"], pp["bias"])

    def vmem():
        return pl.BlockSpec(memory_space=pltpu.MemorySpace.VMEM)

    # Single invocation (no grid): whole (tiny) arrays live in VMEM for the one step.
    return pl.pallas_call(
        gin_kernel,
        out_shape=jax.ShapeDtypeStruct((GP, CP), jnp.float32),
        in_specs=[vmem() for _ in operands],
        out_specs=vmem(),
    )(*operands)


@jax.jit
def gin_convnet_forward(x, edge_index, batch, raw_params):
    """End-to-end forward: scatter-free preprocessing + fused Pallas kernel under one jit."""
    pp = pad_params(raw_params)
    agg, xp, pool = build_inputs(x, edge_index, batch)
    out = _pallas_forward(agg, xp, pool, pp)
    return out[:NUM_GRAPHS, :NUM_CLASSES]


# ---------------- reference (plain JAX, unpadded, faithful PyTorch op ordering) ----------------

def reference_forward(x, edge_index, batch, rp):
    n = x.shape[0]
    src, dst = edge_index[0], edge_index[1]
    agg = jnp.zeros((n, n), jnp.float32).at[dst, src].add(1.0)
    agg = agg + (1.0 + EPS) * jnp.eye(n, dtype=jnp.float32)
    onehot = (batch[None, :] == jnp.arange(NUM_GRAPHS)[:, None]).astype(jnp.float32)
    pool = onehot / onehot.sum(axis=1, keepdims=True)

    def mm(a, b):
        return jnp.dot(a.astype(jnp.bfloat16), b.astype(jnp.bfloat16),
                       preferred_element_type=jnp.float32)

    bn1s, bn1b = bn_affine(rp["bn1"])
    bn2s, bn2b = bn_affine(rp["bn2"])

    h = mm(agg, x)
    h = jnp.maximum(mm(h, rp["w1a"]) + rp["b1a"], 0.0)
    h = mm(h, rp["w1b"]) + rp["b1b"]
    h = jnp.maximum(h, 0.0)
    h = h * bn1s + bn1b

    h = mm(agg, h)
    h = jnp.maximum(mm(h, rp["w2a"]) + rp["b2a"], 0.0)
    h = mm(h, rp["w2b"]) + rp["b2b"]
    h = jnp.maximum(h, 0.0)
    h = h * bn2s + bn2b

    h = jnp.maximum(mm(h, rp["fc1w"]) + rp["fc1b"], 0.0)
    h = mm(h, rp["fc2w"]) + rp["fc2b"]          # per-node fc2 (uncollapsed, as in PyTorch)

    pooled = mm(pool, h)
    return mm(pooled, rp["linw"]) + rp["linb"]


def init_params(key):
    ks = jax.random.split(key, 9)

    def linear(k, fan_in, fan_out):
        kw, kb = jax.random.split(k)
        bound = 1.0 / (fan_in ** 0.5)
        w = jax.random.uniform(kw, (fan_in, fan_out), jnp.float32, -bound, bound)
        b = jax.random.uniform(kb, (fan_out,), jnp.float32, -bound, bound)
        return w, b

    def bn(k):
        k1, k2, k3, k4 = jax.random.split(k, 4)
        return dict(gamma=1.0 + 0.1 * jax.random.normal(k1, (DIM,), jnp.float32),
                    beta=0.1 * jax.random.normal(k2, (DIM,), jnp.float32),
                    mean=0.1 * jax.random.normal(k3, (DIM,), jnp.float32),
                    var=1.0 + 0.1 * jax.random.uniform(k4, (DIM,), jnp.float32))

    w1a, b1a = linear(ks[0], NUM_FEATURES, DIM)
    w1b, b1b = linear(ks[1], DIM, DIM)
    w2a, b2a = linear(ks[2], DIM, DIM)
    w2b, b2b = linear(ks[3], DIM, DIM)
    fc1w, fc1b = linear(ks[4], DIM, DIM)
    fc2w, fc2b = linear(ks[5], DIM, DIM)
    linw, linb = linear(ks[6], DIM, NUM_CLASSES)
    return dict(w1a=w1a, b1a=b1a, w1b=w1b, b1b=b1b, bn1=bn(ks[7]),
                w2a=w2a, b2a=b2a, w2b=w2b, b2b=b2b, bn2=bn(ks[8]),
                fc1w=fc1w, fc1b=fc1b, fc2w=fc2w, fc2b=fc2b,
                linw=linw, linb=linb)


if __name__ == "__main__":
    key = jax.random.PRNGKey(0)
    kx, kp = jax.random.split(key)

    # node features
    x = jax.random.normal(kx, (NUM_NODES, NUM_FEATURES), jnp.float32)

    # two graphs of 8 nodes each, ring topology (undirected => both directions)
    def ring_edges(offset, n):
        s = jnp.arange(n, dtype=jnp.int32) + offset
        d = (jnp.arange(n, dtype=jnp.int32) + 1) % n + offset
        return jnp.stack([jnp.concatenate([s, d]), jnp.concatenate([d, s])])

    edge_index = jnp.concatenate([ring_edges(0, NODES_PER_GRAPH),
                                  ring_edges(NODES_PER_GRAPH, NODES_PER_GRAPH)], axis=1)
    batch = jnp.concatenate([jnp.zeros(NODES_PER_GRAPH, jnp.int32),
                             jnp.ones(NODES_PER_GRAPH, jnp.int32)])

    raw_params = init_params(kp)

    out = gin_convnet_forward(x, edge_index, batch, raw_params)
    out = jax.block_until_ready(out)

    ref = reference_forward(x, edge_index, batch, raw_params)
    assert out.shape == (NUM_GRAPHS, NUM_CLASSES)
    # Tolerance is slightly looser than bf16 eps because the kernel fuses fc2/lin
    # algebraically (exact in real arithmetic; differs only in bf16 rounding points).
    assert jnp.allclose(out, ref, atol=5e-2, rtol=5e-2), (out, ref)

    print("KERNEL_OK")
</pallas_src>

<mosaic_0001>
module attributes {stable_mosaic.version = 11 : i64} {
  func.func @gin_kernel(%arg0: memref<16x16xbf16, #tpu.memory_space<vmem>>, %arg1: memref<16x16xbf16, #tpu.memory_space<vmem>>, %arg2: memref<8x16xbf16, #tpu.memory_space<vmem>>, %arg3: memref<16x32xbf16, #tpu.memory_space<vmem>>, %arg4: memref<32x32xbf16, #tpu.memory_space<vmem>>, %arg5: memref<32x32xbf16, #tpu.memory_space<vmem>>, %arg6: memref<32x32xbf16, #tpu.memory_space<vmem>>, %arg7: memref<32x32xbf16, #tpu.memory_space<vmem>>, %arg8: memref<32x32xbf16, #tpu.memory_space<vmem>>, %arg9: memref<16x32xf32, #tpu.memory_space<vmem>>, %arg10: memref<8x32xf32, #tpu.memory_space<vmem>>) attributes {dimension_semantics = [], scalar_prefetch = 0 : i64, scratch_operands = 0 : i64, tpu.core_type = #tpu.core_type<tc>} {
    %c0 = arith.constant 0 : index
    %c0_0 = arith.constant 0 : index
    %0 = vector.load %arg9[%c0, %c0_0] : memref<16x32xf32, #tpu.memory_space<vmem>>, vector<16x32xf32>
    %1 = vector.extract_strided_slice %0 {offsets = [0, 0], sizes = [1, 32], strides = [1, 1]} : vector<16x32xf32> to vector<1x32xf32>
    %2 = vector.extract_strided_slice %0 {offsets = [1, 0], sizes = [1, 32], strides = [1, 1]} : vector<16x32xf32> to vector<1x32xf32>
    %3 = vector.extract_strided_slice %0 {offsets = [2, 0], sizes = [1, 32], strides = [1, 1]} : vector<16x32xf32> to vector<1x32xf32>
    %4 = vector.extract_strided_slice %0 {offsets = [3, 0], sizes = [1, 32], strides = [1, 1]} : vector<16x32xf32> to vector<1x32xf32>
    %5 = vector.extract_strided_slice %0 {offsets = [4, 0], sizes = [1, 32], strides = [1, 1]} : vector<16x32xf32> to vector<1x32xf32>
    %6 = vector.extract_strided_slice %0 {offsets = [5, 0], sizes = [1, 32], strides = [1, 1]} : vector<16x32xf32> to vector<1x32xf32>
    %7 = vector.extract_strided_slice %0 {offsets = [6, 0], sizes = [1, 32], strides = [1, 1]} : vector<16x32xf32> to vector<1x32xf32>
    %8 = vector.extract_strided_slice %0 {offsets = [7, 0], sizes = [1, 32], strides = [1, 1]} : vector<16x32xf32> to vector<1x32xf32>
    %9 = vector.extract_strided_slice %0 {offsets = [8, 0], sizes = [1, 32], strides = [1, 1]} : vector<16x32xf32> to vector<1x32xf32>
    %10 = vector.extract_strided_slice %0 {offsets = [9, 0], sizes = [1, 32], strides = [1, 1]} : vector<16x32xf32> to vector<1x32xf32>
    %c0_1 = arith.constant 0 : index
    %c0_2 = arith.constant 0 : index
    %11 = vector.load %arg0[%c0_1, %c0_2] : memref<16x16xbf16, #tpu.memory_space<vmem>>, vector<16x16xbf16>
    %c0_3 = arith.constant 0 : index
    %c0_4 = arith.constant 0 : index
    %12 = vector.load %arg1[%c0_3, %c0_4] : memref<16x16xbf16, #tpu.memory_space<vmem>>, vector<16x16xbf16>
    %cst = arith.constant dense<0.000000e+00> : vector<16x16xf32>
    %13 = tpu.matmul %11, %12, %cst {dimension_numbers = #tpu.dot_dimension_numbers<[1], [0], [0], [1], [0, 0, 1, 1], [], []>} : vector<16x16xbf16>, vector<16x16xbf16>, vector<16x16xf32> -> vector<16x16xf32>
    %c0_5 = arith.constant 0 : index
    %c0_6 = arith.constant 0 : index
    %14 = vector.load %arg3[%c0_5, %c0_6] : memref<16x32xbf16, #tpu.memory_space<vmem>>, vector<16x32xbf16>
    %15 = arith.truncf %13 : vector<16x16xf32> to vector<16x16xbf16>
    %cst_7 = arith.constant dense<0.000000e+00> : vector<16x32xf32>
    %16 = tpu.matmul %15, %14, %cst_7 {dimension_numbers = #tpu.dot_dimension_numbers<[1], [0], [0], [1], [0, 0, 1, 1], [], []>} : vector<16x16xbf16>, vector<16x32xbf16>, vector<16x32xf32> -> vector<16x32xf32>
    %17 = vector.broadcast %1 : vector<1x32xf32> to vector<16x32xf32>
    %18 = arith.addf %16, %17 : vector<16x32xf32>
    %cst_8 = arith.constant 0.000000e+00 : f32
    %19 = vector.broadcast %cst_8 : f32 to vector<16x32xf32>
    %20 = arith.maximumf %18, %19 : vector<16x32xf32>
    %c0_9 = arith.constant 0 : index
    %c0_10 = arith.constant 0 : index
    %21 = vector.load %arg4[%c0_9, %c0_10] : memref<32x32xbf16, #tpu.memory_space<vmem>>, vector<32x32xbf16>
    %22 = arith.truncf %20 : vector<16x32xf32> to vector<16x32xbf16>
    %cst_11 = arith.constant dense<0.000000e+00> : vector<16x32xf32>
    %23 = tpu.matmul %22, %21, %cst_11 {dimension_numbers = #tpu.dot_dimension_numbers<[1], [0], [0], [1], [0, 0, 1, 1], [], []>} : vector<16x32xbf16>, vector<32x32xbf16>, vector<16x32xf32> -> vector<16x32xf32>
    %24 = vector.broadcast %2 : vector<1x32xf32> to vector<16x32xf32>
    %25 = arith.addf %23, %24 : vector<16x32xf32>
    %cst_12 = arith.constant 0.000000e+00 : f32
    %26 = vector.broadcast %cst_12 : f32 to vector<16x32xf32>
    %27 = arith.maximumf %25, %26 : vector<16x32xf32>
    %28 = vector.broadcast %3 : vector<1x32xf32> to vector<16x32xf32>
    %29 = arith.mulf %27, %28 : vector<16x32xf32>
    %30 = vector.broadcast %4 : vector<1x32xf32> to vector<16x32xf32>
    %31 = arith.addf %29, %30 : vector<16x32xf32>
    %32 = arith.truncf %31 : vector<16x32xf32> to vector<16x32xbf16>
    %cst_13 = arith.constant dense<0.000000e+00> : vector<16x32xf32>
    %33 = tpu.matmul %11, %32, %cst_13 {dimension_numbers = #tpu.dot_dimension_numbers<[1], [0], [0], [1], [0, 0, 1, 1], [], []>} : vector<16x16xbf16>, vector<16x32xbf16>, vector<16x32xf32> -> vector<16x32xf32>
    %c0_14 = arith.constant 0 : index
    %c0_15 = arith.constant 0 : index
    %34 = vector.load %arg5[%c0_14, %c0_15] : memref<32x32xbf16, #tpu.memory_space<vmem>>, vector<32x32xbf16>
    %35 = arith.truncf %33 : vector<16x32xf32> to vector<16x32xbf16>
    %cst_16 = arith.constant dense<0.000000e+00> : vector<16x32xf32>
    %36 = tpu.matmul %35, %34, %cst_16 {dimension_numbers = #tpu.dot_dimension_numbers<[1], [0], [0], [1], [0, 0, 1, 1], [], []>} : vector<16x32xbf16>, vector<32x32xbf16>, vector<16x32xf32> -> vector<16x32xf32>
    %37 = vector.broadcast %5 : vector<1x32xf32> to vector<16x32xf32>
    %38 = arith.addf %36, %37 : vector<16x32xf32>
    %cst_17 = arith.constant 0.000000e+00 : f32
    %39 = vector.broadcast %cst_17 : f32 to vector<16x32xf32>
    %40 = arith.maximumf %38, %39 : vector<16x32xf32>
    %c0_18 = arith.constant 0 : index
    %c0_19 = arith.constant 0 : index
    %41 = vector.load %arg6[%c0_18, %c0_19] : memref<32x32xbf16, #tpu.memory_space<vmem>>, vector<32x32xbf16>
    %42 = arith.truncf %40 : vector<16x32xf32> to vector<16x32xbf16>
    %cst_20 = arith.constant dense<0.000000e+00> : vector<16x32xf32>
    %43 = tpu.matmul %42, %41, %cst_20 {dimension_numbers = #tpu.dot_dimension_numbers<[1], [0], [0], [1], [0, 0, 1, 1], [], []>} : vector<16x32xbf16>, vector<32x32xbf16>, vector<16x32xf32> -> vector<16x32xf32>
    %44 = vector.broadcast %6 : vector<1x32xf32> to vector<16x32xf32>
    %45 = arith.addf %43, %44 : vector<16x32xf32>
    %cst_21 = arith.constant 0.000000e+00 : f32
    %46 = vector.broadcast %cst_21 : f32 to vector<16x32xf32>
    %47 = arith.maximumf %45, %46 : vector<16x32xf32>
    %48 = vector.broadcast %7 : vector<1x32xf32> to vector<16x32xf32>
    %49 = arith.mulf %47, %48 : vector<16x32xf32>
    %50 = vector.broadcast %8 : vector<1x32xf32> to vector<16x32xf32>
    %51 = arith.addf %49, %50 : vector<16x32xf32>
    %c0_22 = arith.constant 0 : index
    %c0_23 = arith.constant 0 : index
    %52 = vector.load %arg7[%c0_22, %c0_23] : memref<32x32xbf16, #tpu.memory_space<vmem>>, vector<32x32xbf16>
    %53 = arith.truncf %51 : vector<16x32xf32> to vector<16x32xbf16>
    %cst_24 = arith.constant dense<0.000000e+00> : vector<16x32xf32>
    %54 = tpu.matmul %53, %52, %cst_24 {dimension_numbers = #tpu.dot_dimension_numbers<[1], [0], [0], [1], [0, 0, 1, 1], [], []>} : vector<16x32xbf16>, vector<32x32xbf16>, vector<16x32xf32> -> vector<16x32xf32>
    %55 = vector.broadcast %9 : vector<1x32xf32> to vector<16x32xf32>
    %56 = arith.addf %54, %55 : vector<16x32xf32>
    %cst_25 = arith.constant 0.000000e+00 : f32
    %57 = vector.broadcast %cst_25 : f32 to vector<16x32xf32>
    %58 = arith.maximumf %56, %57 : vector<16x32xf32>
    %c0_26 = arith.constant 0 : index
    %c0_27 = arith.constant 0 : index
    %59 = vector.load %arg2[%c0_26, %c0_27] : memref<8x16xbf16, #tpu.memory_space<vmem>>, vector<8x16xbf16>
    %60 = arith.truncf %58 : vector<16x32xf32> to vector<16x32xbf16>
    %cst_28 = arith.constant dense<0.000000e+00> : vector<8x32xf32>
    %61 = tpu.matmul %59, %60, %cst_28 {dimension_numbers = #tpu.dot_dimension_numbers<[1], [0], [0], [1], [0, 0, 1, 1], [], []>} : vector<8x16xbf16>, vector<16x32xbf16>, vector<8x32xf32> -> vector<8x32xf32>
    %c0_29 = arith.constant 0 : index
    %c0_30 = arith.constant 0 : index
    %62 = vector.load %arg8[%c0_29, %c0_30] : memref<32x32xbf16, #tpu.memory_space<vmem>>, vector<32x32xbf16>
    %63 = arith.truncf %61 : vector<8x32xf32> to vector<8x32xbf16>
    %cst_31 = arith.constant dense<0.000000e+00> : vector<8x32xf32>
    %64 = tpu.matmul %63, %62, %cst_31 {dimension_numbers = #tpu.dot_dimension_numbers<[1], [0], [0], [1], [0, 0, 1, 1], [], []>} : vector<8x32xbf16>, vector<32x32xbf16>, vector<8x32xf32> -> vector<8x32xf32>
    %65 = vector.broadcast %10 : vector<1x32xf32> to vector<8x32xf32>
    %66 = arith.addf %64, %65 : vector<8x32xf32>
    %c0_32 = arith.constant 0 : index
    %c0_33 = arith.constant 0 : index
    %67 = vector.load %arg10[%c0_32, %c0_33] : memref<8x32xf32, #tpu.memory_space<vmem>>, vector<8x32xf32>
    tpu.vector_store %arg10[%c0_32, %c0_33], %66 {strides = array<i32>} : memref<8x32xf32, #tpu.memory_space<vmem>>, vector<8x32xf32>,
    return
  }
}

</mosaic_0001>

<bundles_post_ra>
// kernel: gin_convnet_forward.1
= control target key start
LH: loop header
LB: loop body
LE: loop exit
PB: predicated region body
PF: predicated region fallthrough
CT: control target
= control target key end

     0   :  { %vm53_vm0 = vcmask 130048   ;;  %vm118_vm1 = vcmask 261120   ;;  %s533_s1 = inlined_call_operand.vmem [shape: bf16[16,16], index: 1, kind: input, shape index: {}]   ;;  %s534_s0 = inlined_call_operand.vmem [shape: bf16[16,16], index: 0, kind: input, shape index: {}]   ;;  %s535_s3 = inlined_call_operand.vmem [shape: bf16[16,32], index: 3, kind: input, shape index: {}]   ;;  %s536_s4 = inlined_call_operand.vmem [shape: bf16[32,32], index: 4, kind: input, shape index: {}]   ;;  %s537_s9 = inlined_call_operand.vmem [shape: f32[16,32], index: 9, kind: input, shape index: {}]   ;;  %s538_s5 = inlined_call_operand.vmem [shape: bf16[32,32], index: 5, kind: input, shape index: {}]   ;;  %s539_s6 = inlined_call_operand.vmem [shape: bf16[32,32], index: 6, kind: input, shape index: {}]   ;;  %s540_s7 = inlined_call_operand.vmem [shape: bf16[32,32], index: 7, kind: input, shape index: {}]   ;;  %s541_s8 = inlined_call_operand.vmem [shape: bf16[32,32], index: 8, kind: input, shape index: {}]   ;;  %s542_s2 = inlined_call_operand.vmem [shape: bf16[8,16], index: 2, kind: input, shape index: {}]   ;;  %s543_s10 = inlined_call_operand.vmem [shape: f32[8,32], index: 10, kind: output, shape index: {}]  }
   0x1   :  { %v395_v0 = vld [vmem:[%s533_s1] sm:$0xff]  ;;  %v398_v6 = vld [vmem:[%s536_s4 + $0x8] sm:$0xff] }
   0x2   :  { %v394_v1 = vld [vmem:[%s534_s0] sm:$0xff]  ;;  %64 = vmatpush.bf16.msra.mxu0 %v395_v0  ;;  %128 = vmatpush.bf16.msra.mxu2 %v398_v6  ;;  %v400_v31 = vld [vmem:[%s538_s5 + $0x8] sm:$0xff] }
   0x3   :  { %v396_v2 = vld [vmem:[%s535_s3] sm:$0xff]  ;;  %v402_v36 = vld [vmem:[%s539_s6 + $0x8] sm:$0xff] }
   0x4   :  { %91 = vmatpush.bf16.msra.mxu1 %v396_v2  ;;  %v397_v7 = vld [vmem:[%s536_s4] sm:$0xff]  ;;  %v404_v46 = vld [vmem:[%s540_s7 + $0x8] sm:$0xff] }
   0x5   :  { %341 = vmatmul.msk.bf16.vlgmr.msra.gmra.mxu0 %vm53_vm0, %v394_v1  ;;  %v482_v8 = vld [vmem:[%s537_s9] sm:$0xff]  ;;  %v406_v62 = vld [vmem:[%s541_s8 + $0x8] sm:$0xff] }
   0x6   :  { %129 = vmatpush.bf16.msra.mxu2 %v397_v7  ;;  %v74_v10 = vperm.slane %v482_v8, 0  ;;  %v105_v17 = vperm.slane %v482_v8, 1  ;;  %v138_v21 = vperm.slane %v482_v8, 2  ;;  %v141_v26 = vperm.slane %v482_v8, 3  ;;  %186 = vmatpush.bf16.msrb.mxu0 %v400_v31  ;;  %v399_v32 = vld [vmem:[%s538_s5] sm:$0xff]  ;;  %v37_v63 = vld [vmem:[%s537_s9 + $0x8] sm:$0xff] }
   0x7   :  { %v401_v37 = vld [vmem:[%s539_s6] sm:$0xff]  ;;  %v164_v39 = vperm.slane %v482_v8, 4  ;;  %v201_v48 = vperm.slane %v482_v8, 5  ;;  %v233_v52 = vperm.slane %v482_v8, 6  ;;  %v236_v56 = vperm.slane %v482_v8, 7 }
   0x8   :  { %223 = vmatpush.bf16.msrb.mxu1 %v402_v36  ;;  %v403_v47 = vld [vmem:[%s540_s7] sm:$0xff] }
   0x9   :  { %v276_v8 = vld [vmem:[%s542_s2] sm:$0xf] }
   0xa   :  { %187 = vmatpush.bf16.msrb.mxu0 %v399_v32 }
   0xc   :  { %224 = vmatpush.bf16.msrb.mxu1 %v401_v37 }
   0xe   :  { %321 = vmatpush.bf16.msra.mxu0 %v406_v62 }
  0x82   :  { %v66_v3 = vpop.f32.mrf.mxu0 }
  0x8a   :  { %v68_v4 = vpop.f32.mrf.mxu0 }
  0x8b   :  { %v73_v5 = vpack.c.bf16 %v68_v4, %v66_v3 }
  0x8d   :  { %346 = vmatmul.msk.bf16.vlgmr.msra.gmra.mxu1 %vm53_vm0, %v73_v5 }
 0x10a   :  { %v93_v9 = vpop.f32.mrf.mxu1 }
 0x10b   :  { %v94_v11 = vadd.f32 %v93_v9, %v74_v10  ;;  %v405_v9 = vld [vmem:[%s541_s8] sm:$0xff] }
 0x10c   :  { %322 = vmatpush.bf16.msra.mxu0 %v405_v9 }
 0x10d   :  { %v98_v14 = vmax.f32 %v94_v11, 0.0 }
 0x112   :  { %v95_v12 = vpop.f32.mrf.mxu1 }
 0x113   :  { %v96_v13 = vadd.f32 %v95_v12, %v74_v10 }
 0x115   :  { %v99_v15 = vmax.f32 %v96_v13, 0.0  ;;  %v299_v13 = vperm.slane %v37_v63, 1 }
 0x117   :  { %v104_v16 = vpack.c.bf16 %v99_v15, %v98_v14 }
 0x119   :  { %355 = vmatmul.msk.bf16.vlgmr.msra.gmra.mxu2 %vm118_vm1, %v104_v16 }
 0x19c   :  { %v131_v18 = vpop.f32.mrf.mxu2 }
 0x19d   :  { %v132_v19 = vadd.f32 %v131_v18, %v105_v17 }
 0x19f   :  { %v136_v20 = vmax.f32 %v132_v19, 0.0 }
 0x1a1   :  { %v139_v24 = vmul.f32 %v138_v21, %v136_v20 }
 0x1a3   :  { %v142_v28 = vadd.f32 %v141_v26, %v139_v24 }
 0x1a4   :  { %v133_v22 = vpop.f32.mrf.mxu2 }
 0x1a5   :  { %v134_v23 = vadd.f32 %v133_v22, %v105_v17 }
 0x1a7   :  { %v137_v25 = vmax.f32 %v134_v23, 0.0 }
 0x1a9   :  { %v140_v27 = vmul.f32 %v138_v21, %v137_v25 }
 0x1ab   :  { %v143_v29 = vadd.f32 %v141_v26, %v140_v27 }
 0x1ad   :  { %v144_v30 = vpack.c.bf16 %v143_v29, %v142_v28 }
 0x1af   :  { %152 = vmatpush.bf16.msra.mxu3 %v144_v30 }
 0x1b2   :  { %356 = vmatmul.msk.bf16.vlgmr.msra.gmra.mxu3 %vm53_vm0, %v394_v1  ;;  %v244_v1 = vperm.slane %v37_v63, 0 }
 0x1b3   :  { %266 = vmatpush.bf16.msrb.mxu3 %v404_v46 }
 0x1b7   :  { %267 = vmatpush.bf16.msrb.mxu3 %v403_v47 }
 0x235   :  { %v154_v33 = vpop.f32.mrf.mxu3 }
 0x23d   :  { %v156_v34 = vpop.f32.mrf.mxu3 }
 0x23e   :  { %v163_v35 = vpack.c.bf16 %v156_v34, %v154_v33 }
 0x240   :  { %365 = vmatmul.msk.bf16.vlgmr.msrb.gmra.mxu0 %vm118_vm1, %v163_v35 }
 0x2bd   :  { %v189_v38 = vpop.f32.mrf.mxu0 }
 0x2be   :  { %v190_v40 = vadd.f32 %v189_v38, %v164_v39 }
 0x2c0   :  { %v194_v43 = vmax.f32 %v190_v40, 0.0 }
 0x2c5   :  { %v191_v41 = vpop.f32.mrf.mxu0 }
 0x2c6   :  { %v192_v42 = vadd.f32 %v191_v41, %v164_v39 }
 0x2c8   :  { %v195_v44 = vmax.f32 %v192_v42, 0.0 }
 0x2ca   :  { %v200_v45 = vpack.c.bf16 %v195_v44, %v194_v43 }
 0x2cc   :  { %374 = vmatmul.msk.bf16.vlgmr.msrb.gmra.mxu1 %vm118_vm1, %v200_v45 }
 0x349   :  { %v226_v49 = vpop.f32.mrf.mxu1 }
 0x34a   :  { %v227_v50 = vadd.f32 %v226_v49, %v201_v48 }
 0x34c   :  { %v231_v51 = vmax.f32 %v227_v50, 0.0 }
 0x34e   :  { %v234_v55 = vmul.f32 %v233_v52, %v231_v51 }
 0x350   :  { %v237_v59 = vadd.f32 %v236_v56, %v234_v55 }
 0x351   :  { %v228_v53 = vpop.f32.mrf.mxu1 }
 0x352   :  { %v229_v54 = vadd.f32 %v228_v53, %v201_v48 }
 0x354   :  { %v232_v57 = vmax.f32 %v229_v54, 0.0 }
 0x356   :  { %v235_v58 = vmul.f32 %v233_v52, %v232_v57 }
 0x358   :  { %v238_v60 = vadd.f32 %v236_v56, %v235_v58 }
 0x35a   :  { %v243_v61 = vpack.c.bf16 %v238_v60, %v237_v59 }
 0x35c   :  { %383 = vmatmul.msk.bf16.vlgmr.msrb.gmra.mxu3 %vm118_vm1, %v243_v61 }
 0x3df   :  { %v269_v0 = vpop.f32.mrf.mxu3 }
 0x3e0   :  { %v270_v2 = vadd.f32 %v269_v0, %v244_v1 }
 0x3e2   :  { %v274_v5 = vmax.f32 %v270_v2, 0.0 }
 0x3e7   :  { %v271_v3 = vpop.f32.mrf.mxu3 }
 0x3e8   :  { %v272_v4 = vadd.f32 %v271_v3, %v244_v1 }
 0x3ea   :  { %v275_v6 = vmax.f32 %v272_v4, 0.0 }
 0x3ec   :  { %v277_v7 = vpack.c.bf16 %v275_v6, %v274_v5 }
 0x3ee   :  { %288 = vmatpush.bf16.msrb.mxu2 %v277_v7 }
 0x3f1   :  { %384 = vmatmul.msk.bf16.vlgmr.msrb.gmra.mxu2 %vm53_vm0, %v276_v8 }
 0x474   :  { %v290_v10 = vpop.f32.mrf.mxu2 }
 0x475   :  { %v298_v11 = vpack.c.bf16 %v290_v10, %v290_v10 }
 0x477   :  { %393 = vmatmul.msk.bf16.vlgmr.msra.gmra.mxu0 %vm118_vm1, %v298_v11 }
 0x47c   :  { %v292_v12 = vpop.f32.mrf.mxu2 }
 0x4f4   :  { %v324_v14 = vpop.f32.mrf.mxu0 }
 0x4f5   :  { %v325_v15 = vadd.f32 %v324_v14, %v299_v13 }
 0x4f7   :  { %328 = vst.msk [vmem:[%s543_s10] sm:$0xff] %vm118_vm1, %v325_v15 }
 0x4fc   :  { %v326_v16 = vpop.f32.mrf.mxu0 }

</bundles_post_ra>
